<compile_context>
chip_gen: v6e
topology: v6e:2x2x1
jax: 0.10.0
libtpu: 0.0.40
codegen_flags: <defaults>
</compile_context>

<pallas_src>
import jax
import jax.numpy as jnp
from jax.experimental import pallas as pl
from jax.experimental.pallas import tpu as pltpu


_TILE_BYTES = 10 * 1024 * 1024      # raw bytes per streamed x tile (double-buffered)
_VMEM_LIMIT = 32 * 1024 * 1024      # explicit scoped-VMEM limit, safe on v5e/v6e/v7x


def _round_up(n, m):
    return ((n + m - 1) // m) * m


def _pick_rows(total_rows, lane_width, block_rows):
    """Rows per tile, budgeted with the padded (128-lane) last-dim width."""
    padded_lanes = _round_up(max(lane_width, 1), 128)   # last dim pads to 128 lanes
    cap = _TILE_BYTES // (padded_lanes * 4)
    cap = max(8, (cap // 8) * 8)
    if block_rows is not None:                          # test/tuning override
        cap = max(8, (block_rows // 8) * 8)
    if cap >= total_rows:
        return total_rows        # one full-extent block (always layout-legal)
    return cap                   # multiple of 8; last grid block may be partial


def _packed_matvec_kernel(x_ref, w_ref, b_ref, o_ref):
    """sigmoid(x @ w_blk + b) on a lane-dense tile.

    x_ref: [TB, 128] f32 VMEM   w_ref: [128, P] f32 VMEM (block-diagonal weight)
    b_ref: [1]       f32 SMEM   o_ref: [TB, P]  f32 VMEM
    """
    z = jnp.dot(x_ref[...], w_ref[...],
                preferred_element_type=jnp.float32,
                precision=jax.lax.Precision.HIGHEST)     # MXU (vector-extended slot)
    o_ref[...] = jax.nn.sigmoid(z + b_ref[0]).astype(o_ref.dtype)   # EUP


def _rowreduce_kernel(x_ref, w_ref, b_ref, o_ref):
    """Generic fallback: sigmoid(sum(x * w, -1) + b). No transpose.

    x_ref: [TB, F] f32 VMEM   w_ref: [1, F] f32 VMEM
    b_ref: [1]     f32 SMEM   o_ref: [TB, 1] f32 VMEM
    """
    xw = x_ref[...] * w_ref[...]                               # VPU elementwise
    z = jnp.sum(xw, axis=-1, keepdims=True) + b_ref[0]         # last-axis reduce
    o_ref[...] = jax.nn.sigmoid(z).astype(o_ref.dtype)         # EUP, masked store


def two_layer_nn_forward(x, weight, bias, *, block_rows=None):
    """Forward of TwoLayerNN: sigmoid(x @ weight.T + bias).

    x: [B, F] f32, weight: [1, F] (PyTorch nn.Linear layout), bias: [1] -> [B, 1].
    `block_rows` optionally overrides rows-per-tile of the streamed layout.
    """
    B, F = x.shape
    w = weight.reshape(1, F).astype(x.dtype)
    b = bias.reshape(1).astype(x.dtype)

    cost = pl.CostEstimate(flops=2 * B * F, transcendentals=B,
                           bytes_accessed=4 * (B * F + B + F + 1))
    cparams = pltpu.CompilerParams(
        dimension_semantics=("parallel",),     # shard batch tiles across v7x TCs
        vmem_limit_bytes=_VMEM_LIMIT,
    )

    pack = 128 // F if (F <= 128 and 128 % F == 0) else 0
    if pack >= 1 and B % pack == 0:
        # Lane-dense path: fold `pack` rows of x into each 128-wide vreg row and do
        # the per-row matvec as one MXU dot against a block-diagonal weight.
        bp = B // pack
        xp = x.reshape(bp, pack * F)                                   # free reshape
        w_blk = jnp.kron(jnp.eye(pack, dtype=x.dtype), w.reshape(F, 1))  # [128, pack]
        tb = _pick_rows(bp, pack * F, block_rows)
        out = pl.pallas_call(
            _packed_matvec_kernel,
            out_shape=jax.ShapeDtypeStruct((bp, pack), x.dtype),
            grid=(pl.cdiv(bp, tb),),
            in_specs=[
                pl.BlockSpec((tb, pack * F), lambda i: (i, 0)),   # stream x tiles
                pl.BlockSpec((pack * F, pack), lambda i: (0, 0)), # constant weight
                pl.BlockSpec(memory_space=pltpu.MemorySpace.SMEM),  # bias scalar
            ],
            out_specs=pl.BlockSpec((tb, pack), lambda i: (i, 0)),
            compiler_params=cparams,
            cost_estimate=cost,
        )(xp, w_blk, b)
        return out.reshape(B, 1)

    # Generic fallback: per-row multiply + last-axis reduce; partial edge blocks are
    # safe (nothing mixes rows), so no jnp.pad copy of x is needed.
    tb = _pick_rows(B, F, block_rows)
    return pl.pallas_call(
        _rowreduce_kernel,
        out_shape=jax.ShapeDtypeStruct((B, 1), x.dtype),
        grid=(pl.cdiv(B, tb),),
        in_specs=[
            pl.BlockSpec((tb, F), lambda i: (i, 0)),
            pl.BlockSpec((1, F), lambda i: (0, 0)),
            pl.BlockSpec(memory_space=pltpu.MemorySpace.SMEM),
        ],
        out_specs=pl.BlockSpec((tb, 1), lambda i: (i, 0)),
        compiler_params=cparams,
        cost_estimate=cost,
    )(x, w, b)


if __name__ == "__main__":
    B, F = 8, 32
    key = jax.random.PRNGKey(0)
    kx, kw, kb = jax.random.split(key, 3)

    x = jax.random.normal(kx, (B, F), dtype=jnp.float32)
    # Deterministic init mirroring nn.init.uniform_(-0.2, 0.2).
    weight = jax.random.uniform(kw, (1, F), minval=-0.2, maxval=0.2, dtype=jnp.float32)
    bias = jax.random.uniform(kb, (1,), minval=-0.2, maxval=0.2, dtype=jnp.float32)

    def ref_fn(xx):
        # Exact f32 per-row reference (elementwise mul + sum, no matmul precision games).
        z = jnp.sum(xx * weight.reshape(1, F), axis=-1, keepdims=True) + bias
        return jax.nn.sigmoid(z)

    # 1) Module-sized input (B=8, F=32): lane-dense MXU path, single block.
    out = two_layer_nn_forward(x, weight, bias)
    jax.block_until_ready(out)
    assert out.shape == (B, 1)
    assert jnp.allclose(out, ref_fn(x), atol=1e-4, rtol=1e-4)

    # 2) Multi-tile packed path with a partial edge block (no jnp.pad of x).
    x2 = jax.random.normal(jax.random.PRNGKey(1), (300, F), dtype=jnp.float32)
    out2 = two_layer_nn_forward(x2, weight, bias, block_rows=64)
    jax.block_until_ready(out2)
    assert out2.shape == (300, 1)
    assert jnp.allclose(out2, ref_fn(x2), atol=1e-4, rtol=1e-4)

    # 3) Generic row-reduce fallback (B not a multiple of the lane-pack factor),
    #    multi-tile with a partial edge block.
    x3 = jax.random.normal(jax.random.PRNGKey(2), (13, F), dtype=jnp.float32)
    out3 = two_layer_nn_forward(x3, weight, bias, block_rows=8)
    jax.block_until_ready(out3)
    assert out3.shape == (13, 1)
    assert jnp.allclose(out3, ref_fn(x3), atol=1e-4, rtol=1e-4)

    print("KERNEL_OK")
</pallas_src>

<mosaic_0001>
module attributes {stable_mosaic.version = 11 : i64} {
  func.func @_packed_matvec_kernel(%arg0: i32, %arg1: memref<2x128xf32, #tpu.memory_space<vmem>>, %arg2: memref<128x4xf32, #tpu.memory_space<vmem>>, %arg3: memref<1xf32, #tpu.memory_space<smem>>, %arg4: memref<2x4xf32, #tpu.memory_space<vmem>>) attributes {dimension_semantics = [#tpu.dimension_semantics<parallel>], iteration_bounds = array<i64: 1>, scalar_prefetch = 0 : i64, scratch_operands = 0 : i64, tpu.core_type = #tpu.core_type<tc>, window_params = [{transform_indices = @transform_0, window_bounds = array<i64: 2, 128>}, {pipeline_mode = #tpu.pipeline_mode<synchronous>, transform_indices = @transform_1, window_bounds = array<i64: 128, 4>}, {transform_indices = @transform_2, window_bounds = array<i64: 1>}, {transform_indices = @transform_3, window_bounds = array<i64: 2, 4>}]} {
    %c0 = arith.constant 0 : index
    %c0_0 = arith.constant 0 : index
    %0 = vector.load %arg1[%c0, %c0_0] : memref<2x128xf32, #tpu.memory_space<vmem>>, vector<2x128xf32>
    %c0_1 = arith.constant 0 : index
    %c0_2 = arith.constant 0 : index
    %1 = vector.load %arg2[%c0_1, %c0_2] : memref<128x4xf32, #tpu.memory_space<vmem>>, vector<128x4xf32>
    %cst = arith.constant dense<0.000000e+00> : vector<2x4xf32>
    %2 = tpu.matmul %0, %1, %cst {dimension_numbers = #tpu.dot_dimension_numbers<[1], [0], [0], [1], [0, 0, 1, 1], [], []>, precision = #tpu.contract_precision<fp32>} : vector<2x128xf32>, vector<128x4xf32>, vector<2x4xf32> -> vector<2x4xf32>
    %c0_3 = arith.constant 0 : index
    %3 = memref.load %arg3[%c0_3] : memref<1xf32, #tpu.memory_space<smem>>
    %4 = vector.broadcast %3 : f32 to vector<2x4xf32>
    %5 = arith.addf %2, %4 : vector<2x4xf32>
    %6 = arith.negf %5 : vector<2x4xf32>
    %7 = math.exp %6 : vector<2x4xf32>
    %cst_4 = arith.constant 1.000000e+00 : f32
    %8 = vector.broadcast %cst_4 : f32 to vector<2x4xf32>
    %9 = arith.addf %8, %7 : vector<2x4xf32>
    %10 = arith.divf %8, %9 : vector<2x4xf32>
    %c0_5 = arith.constant 0 : index
    %c0_6 = arith.constant 0 : index
    %11 = vector.load %arg4[%c0_5, %c0_6] : memref<2x4xf32, #tpu.memory_space<vmem>>, vector<2x4xf32>
    tpu.vector_store %arg4[%c0_5, %c0_6], %10 {strides = array<i32>} : memref<2x4xf32, #tpu.memory_space<vmem>>, vector<2x4xf32>,
    return
  }
  func.func @transform_0(%arg0: i32) -> (i32, i32) {
    %c0_i32 = arith.constant 0 : i32
    %c0_i32_0 = arith.constant 0 : i32
    return %arg0, %c0_i32 : i32, i32
  }
  func.func @transform_1(%arg0: i32) -> (i32, i32) {
    %c0_i32 = arith.constant 0 : i32
    %c0_i32_0 = arith.constant 0 : i32
    %c0_i32_1 = arith.constant 0 : i32
    return %c0_i32, %c0_i32_0 : i32, i32
  }
  func.func @transform_2(%arg0: i32) -> i32 {
    %c0_i32 = arith.constant 0 : i32
    %c0_i32_0 = arith.constant 0 : i32
    return %c0_i32 : i32
  }
  func.func @transform_3(%arg0: i32) -> (i32, i32) {
    %c0_i32 = arith.constant 0 : i32
    %c0_i32_0 = arith.constant 0 : i32
    return %arg0, %c0_i32 : i32, i32
  }
}

</mosaic_0001>

<bundles_post_ra>
// kernel: tpu_custom_call.1
= control target key start
LH: loop header
LB: loop body
LE: loop exit
PB: predicated region body
PF: predicated region fallthrough
CT: control target
= control target key end

     0   :  { %v1040_v3 = vmov 0.0   ;;  %vm1041_vm0 = vmmov 0   ;;  %s1483_s0 = inlined_call_operand.vmem [shape: f32[2,128], index: 0, kind: input, shape index: {}]   ;;  %s1484_s1 = inlined_call_operand.vmem [shape: f32[128,4], index: 1, kind: input, shape index: {}]   ;;  %s1485_s2 = inlined_call_operand.<no memory space> [shape: f32[1], index: 2, kind: input, shape index: {}]   ;;  %s1486_s3 = inlined_call_operand.hbm [shape: f32[2,4], index: 3, kind: output, shape index: {}]  }
   0x1   :  { %v32_v0 = vld [vmem:[%s1484_s1 + $0x78] sm:$0xff]  ;;  %v31_v1 = vld [vmem:[%s1484_s1 + $0x70] sm:$0xff]  ;;  %v30_v2 = vld [vmem:[%s1484_s1 + $0x68] sm:$0xff]  ;;  %801 = vmatprep.subr.mxu0 %v1040_v3  ;;  %836 = vmatprep.subr.mxu1 %v1040_v3 }
   0x2   :  { %v1073_v4 = vand.u32 4294901760, %v32_v0  ;;  %v1075_v5 = vand.u32 4294901760, %v31_v1  ;;  %v1077_v6 = vand.u32 4294901760, %v30_v2  ;;  %v29_v7 = vld [vmem:[%s1484_s1 + $0x60] sm:$0xff]  ;;  %v28_v8 = vld [vmem:[%s1484_s1 + $0x58] sm:$0xff]  ;;  %v27_v9 = vld [vmem:[%s1484_s1 + $0x50] sm:$0xff]  ;;  %833 = vmatprep.mubr.msk.f32.mxu0 %vm1041_vm0, %v1040_v3  ;;  %868 = vmatprep.mubr.msk.f32.mxu1 %vm1041_vm0, %v1040_v3 }
   0x3   :  { %v1089_v10 = vand.u32 4294901760, %v29_v7  ;;  %v1091_v11 = vand.u32 4294901760, %v28_v8  ;;  %v1093_v12 = vand.u32 4294901760, %v27_v9  ;;  %v26_v13 = vld [vmem:[%s1484_s1 + $0x48] sm:$0xff]  ;;  %v25_v14 = vld [vmem:[%s1484_s1 + $0x40] sm:$0xff]  ;;  %v24_v19 = vld [vmem:[%s1484_s1 + $0x38] sm:$0xff] }
   0x4   :  { %802 = vmatpush3.msra.mxu0 %v1073_v4  ;;  %v1107_v15 = vsub.f32 %v32_v0, %v1073_v4  ;;  %v1110_v16 = vsub.f32 %v31_v1, %v1075_v5  ;;  %v1112_v17 = vand.u32 4294901760, %v26_v13  ;;  %v1115_v18 = vsub.f32 %v30_v2, %v1077_v6  ;;  %v23_v26 = vld [vmem:[%s1484_s1 + $0x30] sm:$0xff] }
   0x5   :  { %803 = vmatprep.subr.mxu0 %v1040_v3  ;;  %v1122_v20 = vsub.f32 %v29_v7, %v1089_v10  ;;  %v1125_v21 = vsub.f32 %v28_v8, %v1091_v11  ;;  %v1131_v25 = vand.u32 4294901760, %v25_v14  ;;  %v1138_v28 = vand.u32 4294901760, %v24_v19 }
   0x6   :  { %804 = vmatpush3.msra.mxu0 %v1075_v5  ;;  %v129_v22 = vand.u32 4294901760, %v1107_v15  ;;  %v136_v23 = vand.u32 4294901760, %v1110_v16  ;;  %v143_v24 = vand.u32 4294901760, %v1115_v18  ;;  %v1142_v30 = vsub.f32 %v27_v9, %v1093_v12 }
   0x7   :  { %805 = vmatprep.subr.mxu0 %v1040_v3  ;;  %v150_v27 = vand.u32 4294901760, %v1122_v20  ;;  %v157_v29 = vand.u32 4294901760, %v1125_v21  ;;  %v1155_v34 = vsub.f32 %v26_v13, %v1112_v17 }
   0x8   :  { %806 = vmatpush3.msra.mxu0 %v1077_v6  ;;  %v130_v31 = vsub.f32 %v1107_v15, %v129_v22  ;;  %v137_v32 = vsub.f32 %v1110_v16, %v136_v23  ;;  %v144_v33 = vsub.f32 %v1115_v18, %v143_v24 }
   0x9   :  { %9 = vsyncpa [#allocation4], 0  ;;  %807 = vmatprep.subr.mxu0 %v1040_v3  ;;  %v1158_v35 = vand.u32 4294901760, %v23_v26  ;;  %v22_v36 = vld [vmem:[%s1484_s1 + $0x28] sm:$0xff]  ;;  %v151_v39 = vsub.f32 %v1122_v20, %v150_v27  ;;  %v164_v40 = vand.u32 4294901760, %v1142_v30  ;;  %v21_v41 = vld [vmem:[%s1484_s1 + $0x20] sm:$0xff]  ;;  %v158_v42 = vsub.f32 %v1125_v21, %v157_v29 }
   0xa   :  { %808 = vmatpush3.msra.mxu0 %v1089_v10  ;;  %v131_v37 = vand.u32 4294901760, %v130_v31  ;;  %v138_v38 = vand.u32 4294901760, %v137_v32  ;;  %v1176_v43 = vsub.f32 %v25_v14, %v1131_v25  ;;  %v145_v44 = vand.u32 4294901760, %v144_v33  ;;  %v20_v49 = vld [vmem:[%s1484_s1 + $0x18] sm:$0xff]  ;;  %v16_v50 = vld [vmem:[%s1483_s0] sm:$0x3] }
   0xb   :  { %809 = vmatprep.subr.mxu0 %v1040_v3  ;;  %v1179_v45 = vand.u32 4294901760, %v22_v36  ;;  %v171_v46 = vand.u32 4294901760, %v1155_v34  ;;  %v1183_v47 = vsub.f32 %v24_v19, %v1138_v28  ;;  %v1187_v48 = vand.u32 4294901760, %v21_v41  ;;  %v19_v54 = vld [vmem:[%s1484_s1 + $0x10] sm:$0xff]  ;;  %v18_v60 = vld [vmem:[%s1484_s1 + $0x8] sm:$0xff]  ;;  %v17_v7 = vld [vmem:[%s1484_s1] sm:$0xff] }
   0xc   :  { %810 = vmatpush3.msra.mxu0 %v1091_v11  ;;  %837 = vmatpush3.msra.mxu1 %v131_v37  ;;  %v152_v51 = vand.u32 4294901760, %v151_v39  ;;  %v165_v52 = vsub.f32 %v1142_v30, %v164_v40  ;;  %v178_v53 = vand.u32 4294901760, %v1176_v43  ;;  %v1204_v55 = vsub.f32 %v23_v26, %v1158_v35  ;;  %s1042_s19 = smov [#allocation3]  }
   0xd   :  { %811 = vmatprep.subr.mxu0 %v1040_v3  ;;  %838 = vmatprep.subr.mxu1 %v1040_v3  ;;  %v159_v56 = vand.u32 4294901760, %v158_v42  ;;  %v185_v57 = vand.u32 4294901760, %v1183_v47  ;;  %v172_v58 = vsub.f32 %v1155_v34, %v171_v46  ;;  %v1213_v59 = vand.u32 4294901760, %v20_v49  ;;  %s690_s20 = sshll.u32 %s1042_s19, 4  ;;  %s691_s20 = int_to_ptr.vmem [resolvable:$true] %s690_s20 }
   0xe   :  { %812 = vmatpush3.msra.mxu0 %v1093_v12  ;;  %839 = vmatpush3.msra.mxu1 %v138_v38  ;;  %v1219_v61 = vsub.f32 %v22_v36, %v1179_v45  ;;  %v1221_v62 = vand.u32 4294901760, %v16_v50  ;;  %v1225_v63 = vand.u32 4294901760, %v19_v54  ;;  %v166_v0 = vand.u32 4294901760, %v165_v52  ;;  %p1023_p1 = scmp.lt.s32.totalorder %s691_s20, %s691_s20 }
   0xf   :  { %813 = vmatprep.subr.mxu0 %v1040_v3  ;;  %840 = vmatprep.subr.mxu1 %v1040_v3  ;;  %v179_v1 = vsub.f32 %v1176_v43, %v178_v53  ;;  %v192_v2 = vand.u32 4294901760, %v1204_v55  ;;  %v1236_v8 = vsub.f32 %v21_v41, %v1187_v48  ;;  %v186_v9 = vsub.f32 %v1183_v47, %v185_v57 }
  0x10   :  { %814 = vmatpush3.msra.mxu0 %v1112_v17  ;;  %841 = vmatpush3.msra.mxu1 %v145_v44  ;;  %v1243_v13 = vand.u32 4294901760, %v18_v60  ;;  %v173_v14 = vand.u32 4294901760, %v172_v58  ;;  %v199_v19 = vand.u32 4294901760, %v1219_v61  ;;  %v1248_v26 = vsub.f32 %v16_v50, %v1221_v62 }
  0x11   :  { %815 = vmatprep.subr.mxu0 %v1040_v3  ;;  %842 = vmatprep.subr.mxu1 %v1040_v3  ;;  %v1251_v31 = vsub.f32 %v20_v49, %v1213_v59  ;;  %v1255_v32 = vand.u32 4294901760, %v17_v7  ;;  %v180_v33 = vand.u32 4294901760, %v179_v1  ;;  %v193_v36 = vsub.f32 %v1204_v55, %v192_v2 }
  0x12   :  { %816 = vmatpush3.msra.mxu0 %v1131_v25  ;;  %843 = vmatpush3.msra.mxu1 %v152_v51  ;;  %v206_v37 = vand.u32 4294901760, %v1236_v8  ;;  %v1263_v38 = vsub.f32 %v19_v54, %v1225_v63  ;;  %v187_v39 = vand.u32 4294901760, %v186_v9  ;;  %v200_v41 = vsub.f32 %v1219_v61, %v199_v19 }
  0x13   :  { %817 = vmatprep.subr.mxu0 %v1040_v3  ;;  %844 = vmatprep.subr.mxu1 %v1040_v3  ;;  %v118_v42 = vand.u32 4294901760, %v1248_v26  ;;  %v213_v44 = vand.u32 4294901760, %v1251_v31  ;;  %v1274_v49 = vsub.f32 %v18_v60, %v1243_v13  ;;  %v194_v50 = vand.u32 4294901760, %v193_v36 }
  0x14   :  { %818 = vmatpush3.msra.mxu0 %v1138_v28  ;;  %845 = vmatpush3.msra.mxu1 %v159_v56  ;;  %v207_v51 = vsub.f32 %v1236_v8, %v206_v37  ;;  %v220_v52 = vand.u32 4294901760, %v1263_v38  ;;  %v1284_v54 = vsub.f32 %v17_v7, %v1255_v32  ;;  %v201_v56 = vand.u32 4294901760, %v200_v41 }
  0x15   :  { %819 = vmatprep.subr.mxu0 %v1040_v3  ;;  %846 = vmatprep.subr.mxu1 %v1040_v3  ;;  %v119_v58 = vsub.f32 %v1248_v26, %v118_v42  ;;  %v214_v60 = vsub.f32 %v1251_v31, %v213_v44  ;;  %vm682_vm1 = vcmask 25600  }
  0x16   :  { %820 = vmatpush3.msra.mxu0 %v1158_v35  ;;  %847 = vmatpush3.msra.mxu1 %v166_v0  ;;  %v227_v0 = vand.u32 4294901760, %v1274_v49  ;;  %v208_v1 = vand.u32 4294901760, %v207_v51  ;;  %v221_v7 = vsub.f32 %v1263_v38, %v220_v52  ;;  %v234_v9 = vand.u32 4294901760, %v1284_v54 }
  0x17   :  { %821 = vmatprep.subr.mxu0 %v1040_v3  ;;  %848 = vmatprep.subr.mxu1 %v1040_v3 }
  0x18   :  { %822 = vmatpush3.msra.mxu0 %v1179_v45  ;;  %849 = vmatpush3.msra.mxu1 %v173_v14  ;;  %v120_v14 = vand.u32 4294901760, %v119_v58  ;;  %v228_v36 = vsub.f32 %v1274_v49, %v227_v0  ;;  %v235_v41 = vsub.f32 %v1284_v54, %v234_v9 }
  0x19   :  { %823 = vmatprep.subr.mxu0 %v1040_v3  ;;  %850 = vmatprep.subr.mxu1 %v1040_v3 }
  0x1a   :  { %824 = vmatpush3.msra.mxu0 %v1187_v48  ;;  %851 = vmatpush3.msra.mxu1 %v180_v33  ;;  %v215_v33 = vand.u32 4294901760, %v214_v60  ;;  %v236_v51 = vand.u32 4294901760, %v235_v41 }
  0x1b   :  { %825 = vmatprep.subr.mxu0 %v1040_v3  ;;  %852 = vmatprep.subr.mxu1 %v1040_v3 }
  0x1c   :  { %826 = vmatpush3.msra.mxu0 %v1213_v59  ;;  %853 = vmatpush3.msra.mxu1 %v187_v39  ;;  %v222_v39 = vand.u32 4294901760, %v221_v7 }
  0x1d   :  { %827 = vmatprep.subr.mxu0 %v1040_v3  ;;  %854 = vmatprep.subr.mxu1 %v1040_v3 }
  0x1e   :  { %828 = vmatpush3.msra.mxu0 %v1225_v63  ;;  %855 = vmatpush3.msra.mxu1 %v194_v50  ;;  %v229_v50 = vand.u32 4294901760, %v228_v36 }
  0x1f   :  { %829 = vmatprep.subr.mxu0 %v1040_v3  ;;  %856 = vmatprep.subr.mxu1 %v1040_v3 }
  0x20   :  { %830 = vmatpush3.msra.mxu0 %v1243_v13  ;;  %857 = vmatpush3.msra.mxu1 %v201_v56 }
  0x21   :  { %831 = vmatprep.subr.mxu0 %v1040_v3  ;;  %858 = vmatprep.subr.mxu1 %v1040_v3 }
  0x22   :  { %832 = vmatpush3.msra.mxu0 %v1255_v32  ;;  %859 = vmatpush3.msra.mxu1 %v208_v1 }
  0x23   :  { %860 = vmatprep.subr.mxu1 %v1040_v3  ;;  %871 = vmatprep.subr.mxu0 %v1040_v3 }
  0x24   :  { %834 = vmatmul.mubr.f32.vlgmr.msra.gmra.mxu0 %v120_v14  ;;  %861 = vmatpush3.msra.mxu1 %v215_v33 }
  0x25   :  { %872 = vmatpush3.msra.mxu0 %v1107_v15  ;;  %862 = vmatprep.subr.mxu1 %v1040_v3 }
  0x26   :  { %873 = vmatprep.subr.mxu0 %v1040_v3  ;;  %863 = vmatpush3.msra.mxu1 %v222_v39 }
  0x27   :  { %874 = vmatpush3.msra.mxu0 %v1110_v16  ;;  %864 = vmatprep.subr.mxu1 %v1040_v3 }
  0x28   :  { %875 = vmatprep.subr.mxu0 %v1040_v3  ;;  %865 = vmatpush3.msra.mxu1 %v229_v50 }
  0x29   :  { %876 = vmatpush3.msra.mxu0 %v1115_v18  ;;  %866 = vmatprep.subr.mxu1 %v1040_v3 }
  0x2a   :  { %877 = vmatprep.subr.mxu0 %v1040_v3  ;;  %867 = vmatpush3.msra.mxu1 %v236_v51 }
  0x2b   :  { %878 = vmatpush3.msra.mxu0 %v1122_v20  ;;  %869 = vmatmul.mubr.f32.vlgmr.msra.gmra.mxu1 %v1221_v62 }
  0x2c   :  { %879 = vmatprep.subr.mxu0 %v1040_v3  ;;  %906 = vmatprep.subr.mxu1 %v1040_v3 }
  0x2d   :  { %880 = vmatpush3.msra.mxu0 %v1125_v21  ;;  %907 = vmatpush3.msra.mxu1 %v1073_v4 }
  0x2e   :  { %881 = vmatprep.subr.mxu0 %v1040_v3  ;;  %908 = vmatprep.subr.mxu1 %v1040_v3 }
  0x2f   :  { %882 = vmatpush3.msra.mxu0 %v1142_v30  ;;  %909 = vmatpush3.msra.mxu1 %v1075_v5 }
  0x30   :  { %883 = vmatprep.subr.mxu0 %v1040_v3  ;;  %910 = vmatprep.subr.mxu1 %v1040_v3 }
  0x31   :  { %884 = vmatpush3.msra.mxu0 %v1155_v34  ;;  %911 = vmatpush3.msra.mxu1 %v1077_v6 }
  0x32   :  { %885 = vmatprep.subr.mxu0 %v1040_v3  ;;  %912 = vmatprep.subr.mxu1 %v1040_v3 }
  0x33   :  { %886 = vmatpush3.msra.mxu0 %v1176_v43  ;;  %913 = vmatpush3.msra.mxu1 %v1089_v10 }
  0x34   :  { %887 = vmatprep.subr.mxu0 %v1040_v3  ;;  %914 = vmatprep.subr.mxu1 %v1040_v3 }
  0x35   :  { %888 = vmatpush3.msra.mxu0 %v1183_v47  ;;  %915 = vmatpush3.msra.mxu1 %v1091_v11 }
  0x36   :  { %889 = vmatprep.subr.mxu0 %v1040_v3  ;;  %916 = vmatprep.subr.mxu1 %v1040_v3 }
  0x37   :  { %890 = vmatpush3.msra.mxu0 %v1204_v55  ;;  %917 = vmatpush3.msra.mxu1 %v1093_v12 }
  0x38   :  { %891 = vmatprep.subr.mxu0 %v1040_v3  ;;  %918 = vmatprep.subr.mxu1 %v1040_v3 }
  0x39   :  { %892 = vmatpush3.msra.mxu0 %v1219_v61  ;;  %919 = vmatpush3.msra.mxu1 %v1112_v17 }
  0x3a   :  { %893 = vmatprep.subr.mxu0 %v1040_v3  ;;  %920 = vmatprep.subr.mxu1 %v1040_v3 }
  0x3b   :  { %894 = vmatpush3.msra.mxu0 %v1236_v8  ;;  %921 = vmatpush3.msra.mxu1 %v1131_v25 }
  0x3c   :  { %895 = vmatprep.subr.mxu0 %v1040_v3  ;;  %922 = vmatprep.subr.mxu1 %v1040_v3 }
  0x3d   :  { %896 = vmatpush3.msra.mxu0 %v1251_v31  ;;  %923 = vmatpush3.msra.mxu1 %v1138_v28 }
  0x3e   :  { %897 = vmatprep.subr.mxu0 %v1040_v3  ;;  %924 = vmatprep.subr.mxu1 %v1040_v3 }
  0x3f   :  { %898 = vmatpush3.msra.mxu0 %v1263_v38  ;;  %925 = vmatpush3.msra.mxu1 %v1158_v35 }
  0x40   :  { %899 = vmatprep.subr.mxu0 %v1040_v3  ;;  %926 = vmatprep.subr.mxu1 %v1040_v3 }
  0x41   :  { %900 = vmatpush3.msra.mxu0 %v1274_v49  ;;  %927 = vmatpush3.msra.mxu1 %v1179_v45 }
  0x42   :  { %901 = vmatprep.subr.mxu0 %v1040_v3  ;;  %928 = vmatprep.subr.mxu1 %v1040_v3 }
  0x43   :  { %902 = vmatpush3.msra.mxu0 %v1284_v54  ;;  %903 = vmatprep.mubr.msk.f32.mxu0 %vm1041_vm0, %v1040_v3 }
  0x44   :  { %929 = vmatpush3.msra.mxu1 %v1187_v48  ;;  %904 = vmatmul.mubr.f32.vlgmr.msra.gmra.mxu0 %v1248_v26 }
  0x45   :  { %930 = vmatprep.subr.mxu1 %v1040_v3  ;;  %941 = vmatprep.subr.mxu0 %v1040_v3 }
  0x46   :  { %931 = vmatpush3.msra.mxu1 %v1213_v59  ;;  %942 = vmatpush3.msra.mxu0 %v129_v22 }
  0x47   :  { %932 = vmatprep.subr.mxu1 %v1040_v3  ;;  %943 = vmatprep.subr.mxu0 %v1040_v3 }
  0x48   :  { %933 = vmatpush3.msra.mxu1 %v1225_v63  ;;  %944 = vmatpush3.msra.mxu0 %v136_v23 }
  0x49   :  { %934 = vmatprep.subr.mxu1 %v1040_v3  ;;  %945 = vmatprep.subr.mxu0 %v1040_v3 }
  0x4a   :  { %935 = vmatpush3.msra.mxu1 %v1243_v13  ;;  %946 = vmatpush3.msra.mxu0 %v143_v24 }
  0x4b   :  { %936 = vmatprep.subr.mxu1 %v1040_v3  ;;  %947 = vmatprep.subr.mxu0 %v1040_v3 }
  0x4c   :  { %937 = vmatpush3.msra.mxu1 %v1255_v32  ;;  %938 = vmatprep.mubr.msk.f32.mxu1 %vm1041_vm0, %v1040_v3 }
  0x4d   :  { %948 = vmatpush3.msra.mxu0 %v150_v27  ;;  %939 = vmatmul.mubr.f32.vlgmr.msra.gmra.mxu1 %v118_v42 }
  0x4e   :  { %949 = vmatprep.subr.mxu0 %v1040_v3  ;;  %976 = vmatprep.subr.mxu1 %v1040_v3 }
  0x4f   :  { %950 = vmatpush3.msra.mxu0 %v157_v29  ;;  %977 = vmatpush3.msra.mxu1 %v1073_v4 }
  0x50   :  { %951 = vmatprep.subr.mxu0 %v1040_v3  ;;  %978 = vmatprep.subr.mxu1 %v1040_v3 }
  0x51   :  { %952 = vmatpush3.msra.mxu0 %v164_v40  ;;  %979 = vmatpush3.msra.mxu1 %v1075_v5 }
  0x52   :  { %953 = vmatprep.subr.mxu0 %v1040_v3  ;;  %980 = vmatprep.subr.mxu1 %v1040_v3 }
  0x53   :  { %954 = vmatpush3.msra.mxu0 %v171_v46  ;;  %981 = vmatpush3.msra.mxu1 %v1077_v6 }
  0x54   :  { %955 = vmatprep.subr.mxu0 %v1040_v3  ;;  %982 = vmatprep.subr.mxu1 %v1040_v3 }
  0x55   :  { %956 = vmatpush3.msra.mxu0 %v178_v53  ;;  %983 = vmatpush3.msra.mxu1 %v1089_v10 }
  0x56   :  { %957 = vmatprep.subr.mxu0 %v1040_v3  ;;  %984 = vmatprep.subr.mxu1 %v1040_v3 }
  0x57   :  { %958 = vmatpush3.msra.mxu0 %v185_v57  ;;  %985 = vmatpush3.msra.mxu1 %v1091_v11 }
  0x58   :  { %959 = vmatprep.subr.mxu0 %v1040_v3  ;;  %986 = vmatprep.subr.mxu1 %v1040_v3 }
  0x59   :  { %960 = vmatpush3.msra.mxu0 %v192_v2  ;;  %987 = vmatpush3.msra.mxu1 %v1093_v12 }
  0x5a   :  { %961 = vmatprep.subr.mxu0 %v1040_v3  ;;  %988 = vmatprep.subr.mxu1 %v1040_v3 }
  0x5b   :  { %962 = vmatpush3.msra.mxu0 %v199_v19  ;;  %989 = vmatpush3.msra.mxu1 %v1112_v17  ;;  %v34_v17 = vstv %s1485_s2  ;;  %s1018_s2 = scalar_lea.vmem %s691_s20, 32 }
  0x5c   :  { %963 = vmatprep.subr.mxu0 %v1040_v3  ;;  %990 = vmatprep.subr.mxu1 %v1040_v3  ;;  %p1019_p0 = scmp.ne.s32.totalorder %s691_s20, %s1018_s2  ;;  %p1024_p2 = scmp.lt.s32.totalorder %s1018_s2, %s1018_s2 }
  0x5d   :  { %964 = vmatpush3.msra.mxu0 %v206_v37  ;;  %991 = vmatpush3.msra.mxu1 %v1131_v25 }
  0x5e   :  { %965 = vmatprep.subr.mxu0 %v1040_v3  ;;  %992 = vmatprep.subr.mxu1 %v1040_v3  ;;  %p1025_p3 = por %p1024_p2, %p1023_p1 }
  0x5f   :  { %966 = vmatpush3.msra.mxu0 %v213_v44  ;;  %993 = vmatpush3.msra.mxu1 %v1138_v28 }
  0x60   :  { %967 = vmatprep.subr.mxu0 %v1040_v3  ;;  %994 = vmatprep.subr.mxu1 %v1040_v3  ;;  %p1026_p4 = pnand %p1025_p3, %p1019_p0 }
  0x61   :  { %968 = vmatpush3.msra.mxu0 %v220_v52  ;;  %995 = vmatpush3.msra.mxu1 %v1158_v35 }
  0x62   :  { %969 = vmatprep.subr.mxu0 %v1040_v3  ;;  %996 = vmatprep.subr.mxu1 %v1040_v3 }
  0x63   :  { %970 = vmatpush3.msra.mxu0 %v227_v0  ;;  %997 = vmatpush3.msra.mxu1 %v1179_v45 }
  0x64   :  { %971 = vmatprep.subr.mxu0 %v1040_v3  ;;  %998 = vmatprep.subr.mxu1 %v1040_v3 }
  0x65   :  { %972 = vmatpush3.msra.mxu0 %v234_v9  ;;  %973 = vmatprep.mubr.msk.f32.mxu0 %vm1041_vm0, %v1040_v3 }
  0x66   :  { %999 = vmatpush3.msra.mxu1 %v1187_v48  ;;  %974 = vmatmul.mubr.f32.vlgmr.msra.gmra.mxu0 %v1221_v62 }
  0x67   :  { %1000 = vmatprep.subr.mxu1 %v1040_v3  ;;  %1008 = vmatprep.mubr.msk.f32.mxu1 %vm1041_vm0, %v1040_v3 }
  0x68   :  { %1001 = vmatpush3.msra.mxu1 %v1213_v59 }
  0x69   :  { %1002 = vmatprep.subr.mxu1 %v1040_v3 }
  0x6a   :  { %1003 = vmatpush3.msra.mxu1 %v1225_v63 }
  0x6b   :  { %1004 = vmatprep.subr.mxu1 %v1040_v3 }
  0x6c   :  { %1005 = vmatpush3.msra.mxu1 %v1243_v13 }
  0x6d   :  { %1006 = vmatprep.subr.mxu1 %v1040_v3 }
  0x6e   :  { %1007 = vmatpush3.msra.mxu1 %v1255_v32 }
  0x6f   :  { %1009 = vmatmul.mubr.f32.vlgmr.msra.gmra.mxu1 %v1221_v62 }
  0xe4   :  { %v122_v4 = vpop.f32.mrf.mxu0 }
  0xe5   :  { %v123_v18 = vadd.f32 %v122_v4, %v34_v17 }
  0xe6   :  { %v835_v5 = vpop.f32.mrf.mxu0 }
  0xeb   :  { %v273_v6 = vpop.f32.mrf.mxu1 }
  0xec   :  { %v274_v21 = vadd.f32 %v273_v6, %v123_v18 }
  0xed   :  { %v870_v10 = vpop.f32.mrf.mxu1 }
 0x104   :  { %v377_v11 = vpop.f32.mrf.mxu0 }
 0x105   :  { %v378_v22 = vadd.f32 %v377_v11, %v274_v21 }
 0x106   :  { %v905_v12 = vpop.f32.mrf.mxu0 }
 0x10d   :  { %v466_v15 = vpop.f32.mrf.mxu1 }
 0x10e   :  { %v467_v23 = vadd.f32 %v466_v15, %v378_v22 }
 0x10f   :  { %v940_v16 = vpop.f32.mrf.mxu1 }
 0x126   :  { %v585_v20 = vpop.f32.mrf.mxu0 }
 0x127   :  { %v586_v24 = vadd.f32 %v585_v20, %v467_v23 }
 0x128   :  { %v975_v3 = vpop.f32.mrf.mxu0 }
 0x12f   :  { %v672_v25 = vpop.f32.mrf.mxu1 }
 0x130   :  { %v673_v27 = vadd.f32 %v672_v25, %v586_v24 }
 0x131   :  { %v1010_v28 = vpop.f32.mrf.mxu1 }
 0x132   :  { %v698_v29 = vmul.f32 -1.442695, %v673_v27 }
 0x134   :  { %1014 = vpow2.f32 %v698_v29 }
 0x141   :  { %v1015_v30 = vpop.eup %1014 }
 0x142   :  { %v679_v34 = vadd.f32 1.0, %v1015_v30 }
 0x144   :  { %1016 = vrcp.f32 %v679_v34 }
 0x151   :  { %v1017_v35 = vpop.eup %1016 }
 0x152   :  { %683 = vst.msk [vmem:[#allocation3] sm:$0x3] %vm682_vm1, %v1017_v35 }
 0x153   :  { %1029 = shalt.err (!%p1026_p4)
}
 0x154   :  { %693 = dma.vmem_to_hbm [thread:$0]  %s691_s20, 32, %s1486_s3, [#allocation4]  }
 0x155   :  { %1038 = dma.done.wait [#allocation4], 32  }
 0x156   :  { %1039 = vsyncadd [#allocation4], 4294967264 }
 0x157   :  { %697 = vsyncpa [#allocation4], 1 }

</bundles_post_ra>
